<compile_context>
chip_gen: v7x
topology: tpu7x:2x2x1
jax: 0.10.0
libtpu: 0.0.40
codegen_flags: <defaults>
</compile_context>

<pallas_src>
import functools

import jax
import jax.numpy as jnp
from jax.experimental import pallas as pl
from jax.experimental.pallas import tpu as pltpu


def _tpu_kind() -> str:
    try:
        return jax.devices()[0].device_kind.lower()
    except Exception:
        return ""


def _round_down(x: int, m: int) -> int:
    return (x // m) * m


def _cdiv(a: int, b: int) -> int:
    return -(-a // b)


def _entropy_kernel(logits_ref, mask_ref, out_ref, row_acc_ref, *,
                    tm, steps_per_core, total_rows, compute_dtype):
    c = pl.program_id(0)          # core-split axis ("parallel")
    i = pl.program_id(1)          # row-tile reduction axis ("arbitrary")

    @pl.when(i == 0)
    def _():
        row_acc_ref[...] = jnp.zeros_like(row_acc_ref)

    # ---- per-row entropy:  H = log(z) - sum(e * s) / z,  s = x - max(x) ----
    x = logits_ref[...].astype(compute_dtype)              # (tm, V)
    m = jnp.max(x, axis=-1, keepdims=True)                  # (tm, 1)  XLU
    s = x - m                                                # (tm, V)  VALU
    e = jnp.exp(s)                                           # (tm, V)  EUP
    z = jnp.sum(e, axis=-1, keepdims=True,
                dtype=jnp.float32)                           # (tm, 1)
    es = jnp.sum(e * s, axis=-1, keepdims=True,
                 dtype=jnp.float32)                          # (tm, 1)
    tok_ent = jnp.log(z) - es / z                            # (tm, 1)  f32

    mask_tile = mask_ref[...].astype(jnp.float32)            # (tm, 1)

    # Row-validity mask: the last tile may be partial (garbage rows past the
    # array end) and phantom tiles (clamped index_map) must contribute zero.
    tile_idx = c * steps_per_core + i                        # UNclamped index
    row0 = tile_idx * tm
    row_ids = row0 + jax.lax.broadcasted_iota(jnp.int32, (tm, 1), 0)
    valid = row_ids < total_rows

    row_acc_ref[...] += jnp.where(valid, tok_ent * mask_tile, 0.0)

    @pl.when(i == steps_per_core - 1)
    def _():
        out_ref[0, 0] = jnp.sum(row_acc_ref[...])            # scalar -> SMEM


def entropy_loss(logits: jax.Array, action_mask: jax.Array) -> jax.Array:
    """Pallas implementation of EntropyLoss.forward.

    logits: (B, T, V) float (f32 or bf16); action_mask: (B, T) float/bool (0/1).
    Returns a scalar float32 entropy.
    """
    B, T, V = logits.shape
    assert action_mask.shape == (B, T)
    rows = B * T

    kind = _tpu_kind()
    is_v7 = ("v7" in kind) or ("7x" in kind)
    bf16_vpu = any(tag in kind for tag in ("v6", "v7", "7x"))
    num_cores = 2 if is_v7 else 1          # 2 TCs only on v7x

    store_dtype = jnp.dtype(logits.dtype)
    compute_dtype = (jnp.bfloat16
                     if (store_dtype == jnp.dtype(jnp.bfloat16) and bf16_vpu)
                     else jnp.float32)

    logits2d = logits.reshape(rows, V)
    mask2d = action_mask.reshape(rows, 1).astype(jnp.float32)

    # Only truly tiny inputs get padded (so an 8-sublane block fits the array).
    rows_arr = rows
    if rows_arr < 8:
        pad = 8 - rows_arr
        logits2d = jnp.pad(logits2d, ((0, pad), (0, 0)))
        mask2d = jnp.pad(mask2d, ((0, pad), (0, 0)))
        rows_arr = 8

    store_bytes = store_dtype.itemsize
    compute_bytes = jnp.dtype(compute_dtype).itemsize
    # Conservative per-row VMEM footprint: double-buffered logits tile plus up
    # to ~4 full-width compute-dtype temporaries (cast/s/e/e*s), plus narrow
    # (tm,1) accumulators/mask padded to 128 lanes.
    per_row = V * (2 * store_bytes + 4 * compute_bytes) + 4096

    footprint_budget = (32 << 20) if is_v7 else (84 << 20)   # v7x has 64 MiB VMEM
    vmem_cap = (44 << 20) if is_v7 else (100 << 20)

    tm = _round_down(footprint_budget // per_row, 8)
    tm_cap = max(8, _round_down(_cdiv(rows_arr, num_cores), 8))
    tm = int(max(8, min(tm, 2048, tm_cap)))                  # tm <= rows_arr always

    total_tiles = _cdiv(rows_arr, tm)
    steps_per_core = _cdiv(total_tiles, num_cores)

    vmem_limit = int(min(vmem_cap, max(16 << 20, tm * per_row + (6 << 20))))

    clamp = total_tiles - 1

    def tile_map(c, i):
        # Clamp phantom tiles (when total_tiles doesn't divide evenly across
        # cores) to the last valid tile; their rows are masked out in-kernel.
        return (jnp.minimum(c * steps_per_core + i, clamp), 0)

    kernel = functools.partial(
        _entropy_kernel, tm=tm, steps_per_core=steps_per_core,
        total_rows=rows, compute_dtype=compute_dtype)

    cost = pl.CostEstimate(
        flops=5 * rows * V,
        transcendentals=rows * V,
        bytes_accessed=rows * V * store_bytes + rows * 4 + num_cores * 4,
    )

    partials = pl.pallas_call(
        kernel,
        out_shape=jax.ShapeDtypeStruct((num_cores, 1), jnp.float32),
        grid_spec=pltpu.PrefetchScalarGridSpec(
            num_scalar_prefetch=0,
            grid=(num_cores, steps_per_core),
            in_specs=[
                pl.BlockSpec((tm, V), tile_map),     # logits tile, streamed
                pl.BlockSpec((tm, 1), tile_map),     # mask tile, streamed
            ],
            out_specs=pl.BlockSpec((1, 1), lambda c, i: (c, 0),
                                   memory_space=pltpu.MemorySpace.SMEM),
            scratch_shapes=[pltpu.VMEM((tm, 1), jnp.float32)],
        ),
        compiler_params=pltpu.CompilerParams(
            dimension_semantics=("parallel", "arbitrary"),
            vmem_limit_bytes=vmem_limit,
        ),
        cost_estimate=cost,
    )(logits2d, mask2d)

    # mean over T then mean over B == sum / (B*T); invalid/padded rows are 0.
    return (jnp.sum(partials) / jnp.float32(B * T)).astype(jnp.float32)


def _entropy_loss_ref(logits, action_mask):
    logprobs = jax.nn.log_softmax(logits.astype(jnp.float32), axis=-1)
    token_entropy = -jnp.sum(logprobs * jnp.exp(logprobs), axis=-1)
    masked = token_entropy * action_mask.astype(jnp.float32)
    sample_entropy = jnp.mean(masked, axis=-1)
    return jnp.mean(sample_entropy)


if __name__ == "__main__":
    key = jax.random.PRNGKey(0)
    k1, k2, k3, k4, k5, k6 = jax.random.split(key, 6)

    # 1) Small f32 example matching the module's forward signature.
    B, T, V = 2, 8, 128
    logits = jax.random.normal(k1, (B, T, V), dtype=jnp.float32)
    action_mask = (jax.random.uniform(k2, (B, T)) > 0.3).astype(jnp.float32)
    out = jax.block_until_ready(entropy_loss(logits, action_mask))
    ref = _entropy_loss_ref(logits, action_mask)
    assert jnp.allclose(out, ref, atol=1e-5, rtol=1e-5), (out, ref)

    # 2) B*T not a multiple of 8/tile: exercises the masked partial-tail path.
    B2, T2, V2 = 3, 10, 256
    logits2 = jax.random.normal(k3, (B2, T2, V2), dtype=jnp.float32)
    mask2 = (jax.random.uniform(k4, (B2, T2)) > 0.5).astype(jnp.float32)
    out2 = jax.block_until_ready(entropy_loss(logits2, mask2))
    ref2 = _entropy_loss_ref(logits2, mask2)
    assert jnp.allclose(out2, ref2, atol=1e-5, rtol=1e-5), (out2, ref2)

    # 3) bf16 logits in HBM (bf16 vector math on v6e/v7x, f32 compute on v5e).
    B3, T3, V3 = 2, 8, 256
    logits3 = jax.random.normal(k5, (B3, T3, V3),
                                dtype=jnp.float32).astype(jnp.bfloat16)
    mask3 = (jax.random.uniform(k6, (B3, T3)) > 0.4).astype(jnp.float32)
    out3 = jax.block_until_ready(entropy_loss(logits3, mask3))
    ref3 = _entropy_loss_ref(logits3, mask3)
    assert jnp.allclose(out3, ref3, atol=1.5e-1, rtol=0.0), (out3, ref3)

    print("KERNEL_OK")
</pallas_src>

<mosaic_0001>
module attributes {stable_mosaic.version = 11 : i64} {
  func.func @_entropy_kernel(%arg0: i32, %arg1: i32, %arg2: memref<16x128xf32, #tpu.memory_space<vmem>>, %arg3: memref<16x1xf32, #tpu.memory_space<vmem>>, %arg4: memref<1x1xf32, #tpu.memory_space<smem>>, %arg5: memref<16x1xf32, #tpu.memory_space<vmem>>) attributes {dimension_semantics = [#tpu.dimension_semantics<parallel>, #tpu.dimension_semantics<arbitrary>], iteration_bounds = array<i64: 1, 1>, scalar_prefetch = 0 : i64, scratch_operands = 1 : i64, tpu.core_type = #tpu.core_type<tc>, window_params = [{transform_indices = @transform_0, window_bounds = array<i64: 16, 128>}, {transform_indices = @transform_1, window_bounds = array<i64: 16, 1>}, {transform_indices = @transform_2, window_bounds = array<i64: 1, 1>}]} {
    %c0_i32 = arith.constant 0 : i32
    %0 = arith.cmpi eq, %arg1, %c0_i32 : i32
    %1 = arith.extui %0 : i1 to i32
    %c0_i32_0 = arith.constant 0 : i32
    %2 = arith.cmpi ne, %1, %c0_i32_0 : i32
    scf.if %2 {
      %cst_14 = arith.constant 0.000000e+00 : f32
      %35 = vector.broadcast %cst_14 : f32 to vector<16x1xf32>
      %c0_15 = arith.constant 0 : index
      %c0_16 = arith.constant 0 : index
      %36 = vector.load %arg5[%c0_15, %c0_16] : memref<16x1xf32, #tpu.memory_space<vmem>>, vector<16x1xf32>
      tpu.vector_store %arg5[%c0_15, %c0_16], %35 {strides = array<i32>} : memref<16x1xf32, #tpu.memory_space<vmem>>, vector<16x1xf32>,
    } else {
    }
    %c0 = arith.constant 0 : index
    %c0_1 = arith.constant 0 : index
    %3 = vector.load %arg2[%c0, %c0_1] : memref<16x128xf32, #tpu.memory_space<vmem>>, vector<16x128xf32>
    %cst = arith.constant dense<0xFF800000> : vector<16xf32>
    %4 = vector.multi_reduction <maximumf>, %3, %cst [1] : vector<16x128xf32> to vector<16xf32>
    %5 = vector.shape_cast %4 : vector<16xf32> to vector<16x1xf32>
    %6 = vector.broadcast %5 : vector<16x1xf32> to vector<16x128xf32>
    %7 = arith.subf %3, %6 : vector<16x128xf32>
    %8 = math.exp %7 : vector<16x128xf32>
    %cst_2 = arith.constant dense<0.000000e+00> : vector<16xf32>
    %9 = vector.multi_reduction <add>, %8, %cst_2 [1] : vector<16x128xf32> to vector<16xf32>
    %10 = vector.shape_cast %9 : vector<16xf32> to vector<16x1xf32>
    %11 = arith.mulf %8, %7 : vector<16x128xf32>
    %cst_3 = arith.constant dense<0.000000e+00> : vector<16xf32>
    %12 = vector.multi_reduction <add>, %11, %cst_3 [1] : vector<16x128xf32> to vector<16xf32>
    %13 = vector.shape_cast %12 : vector<16xf32> to vector<16x1xf32>
    %14 = math.log %10 : vector<16x1xf32>
    %15 = arith.divf %13, %10 : vector<16x1xf32>
    %16 = arith.subf %14, %15 : vector<16x1xf32>
    %c0_4 = arith.constant 0 : index
    %c0_5 = arith.constant 0 : index
    %17 = vector.load %arg3[%c0_4, %c0_5] : memref<16x1xf32, #tpu.memory_space<vmem>>, vector<16x1xf32>
    %c1_i32 = arith.constant 1 : i32
    %18 = arith.muli %arg0, %c1_i32 : i32
    %19 = arith.addi %18, %arg1 : i32
    %c16_i32 = arith.constant 16 : i32
    %20 = arith.muli %19, %c16_i32 : i32
    %21 = tpu.iota {dimensions = array<i32: 0>} : vector<16x1xi32>
    %22 = vector.broadcast %20 : i32 to vector<16x1xi32>
    %23 = arith.addi %22, %21 : vector<16x1xi32>
    %c16_i32_6 = arith.constant 16 : i32
    %24 = vector.broadcast %c16_i32_6 : i32 to vector<16x1xi32>
    %25 = arith.cmpi slt, %23, %24 : vector<16x1xi32>
    %c0_7 = arith.constant 0 : index
    %c0_8 = arith.constant 0 : index
    %26 = vector.load %arg5[%c0_7, %c0_8] : memref<16x1xf32, #tpu.memory_space<vmem>>, vector<16x1xf32>
    %27 = arith.mulf %16, %17 : vector<16x1xf32>
    %cst_9 = arith.constant 0.000000e+00 : f32
    %28 = vector.broadcast %cst_9 : f32 to vector<16x1xf32>
    %29 = arith.select %25, %27, %28 : vector<16x1xi1>, vector<16x1xf32>
    %30 = arith.addf %26, %29 : vector<16x1xf32>
    %c0_10 = arith.constant 0 : index
    %c0_11 = arith.constant 0 : index
    %31 = vector.load %arg5[%c0_10, %c0_11] : memref<16x1xf32, #tpu.memory_space<vmem>>, vector<16x1xf32>
    tpu.vector_store %arg5[%c0_10, %c0_11], %30 {strides = array<i32>} : memref<16x1xf32, #tpu.memory_space<vmem>>, vector<16x1xf32>,
    %c0_i32_12 = arith.constant 0 : i32
    %32 = arith.cmpi eq, %arg1, %c0_i32_12 : i32
    %33 = arith.extui %32 : i1 to i32
    %c0_i32_13 = arith.constant 0 : i32
    %34 = arith.cmpi ne, %33, %c0_i32_13 : i32
    scf.if %34 {
      %c0_14 = arith.constant 0 : index
      %c0_15 = arith.constant 0 : index
      %35 = vector.load %arg5[%c0_14, %c0_15] : memref<16x1xf32, #tpu.memory_space<vmem>>, vector<16x1xf32>
      %36 = vector.shape_cast %35 : vector<16x1xf32> to vector<1x16x1xf32>
      %cst_16 = arith.constant dense<0.000000e+00> : vector<1xf32>
      %37 = vector.multi_reduction <add>, %36, %cst_16 [1, 2] : vector<1x16x1xf32> to vector<1xf32>
      %38 = vector.shape_cast %37 : vector<1xf32> to vector<1x1x1xf32>
      %39 = vector.extract %38[0, 0, 0] : f32 from vector<1x1x1xf32>
      %c0_17 = arith.constant 0 : index
      %c0_18 = arith.constant 0 : index
      %40 = memref.load %arg4[%c0_17, %c0_18] : memref<1x1xf32, #tpu.memory_space<smem>>
      memref.store %39, %arg4[%c0_17, %c0_18] : memref<1x1xf32, #tpu.memory_space<smem>>
    } else {
    }
    return
  }
  func.func @transform_0(%arg0: i32, %arg1: i32) -> (i32, i32) {
    %c1_i32 = arith.constant 1 : i32
    %0 = arith.muli %arg0, %c1_i32 : i32
    %1 = arith.addi %0, %arg1 : i32
    %c0_i32 = arith.constant 0 : i32
    %2 = arith.minsi %1, %c0_i32 : i32
    %c0_i32_0 = arith.constant 0 : i32
    %c0_i32_1 = arith.constant 0 : i32
    return %2, %c0_i32_0 : i32, i32
  }
  func.func @transform_1(%arg0: i32, %arg1: i32) -> (i32, i32) {
    %c1_i32 = arith.constant 1 : i32
    %0 = arith.muli %arg0, %c1_i32 : i32
    %1 = arith.addi %0, %arg1 : i32
    %c0_i32 = arith.constant 0 : i32
    %2 = arith.minsi %1, %c0_i32 : i32
    %c0_i32_0 = arith.constant 0 : i32
    %c0_i32_1 = arith.constant 0 : i32
    return %2, %c0_i32_0 : i32, i32
  }
  func.func @transform_2(%arg0: i32, %arg1: i32) -> (i32, i32) {
    %c0_i32 = arith.constant 0 : i32
    %c0_i32_0 = arith.constant 0 : i32
    return %arg0, %c0_i32 : i32, i32
  }
}

</mosaic_0001>

<bundles_post_ra>
// kernel: tpu_custom_call.1
= control target key start
LH: loop header
LB: loop body
LE: loop exit
PB: predicated region body
PF: predicated region fallthrough
CT: control target
= control target key end

     0   :  { %s257_s0 = inlined_call_operand.vmem [shape: f32[16,128], index: 0, kind: input, shape index: {}]   ;;  %s258_s1 = inlined_call_operand.vmem [shape: f32[16,1], index: 1, kind: input, shape index: {}]   ;;  %s259_s2 = inlined_call_operand.hbm [shape: f32[1,1], index: 2, kind: output, shape index: {}]  }
   0x1   :  { %v83_v0 = vld [vmem:[%s257_s0] sm:$0xff] }
   0x2   :  { %7 = vsyncpa [#allocation4], 0  ;;  %85 = vmax.xlane.f32.xlu0 %v83_v0  ;;  %v84_v1 = vld [vmem:[%s257_s0 + $0x8] sm:$0xff]  ;;  %vm80_vm0 = vcmask 7168   ;;  %v210_v12 = vmov 0.0   ;;  %v115_v20 = vld [vmem:[%s258_s1] sm:$0xff] }
   0x3   :  { %81 = vst.msk [vmem:[#allocation2] sm:$0xff] %vm80_vm0, %v210_v12  ;;  %82 = vst.msk [vmem:[#allocation2 + $0x8] sm:$0xff] %vm80_vm0, %v210_v12  ;;  %v116_v29 = vld [vmem:[%s258_s1 + $0x8] sm:$0xff]  ;;  %s198_s18 = scalar_lea.hbm %s259_s2, 16 }
   0x4   :  { %p199_p0 = scmp.ne.s32.totalorder %s259_s2, %s198_s18  ;;  %p202_p1 = scmp.lt.u32.totalorder %s198_s18, %s259_s2 }
   0x6   :  { %87 = vmax.xlane.f32.xlu0 %v84_v1  ;;  %p204_p2 = pnand %p202_p1, %p199_p0 }
   0xa   :  { %v127_v24 = vld [vmem:[#allocation2] sm:$0xff]  ;;  %v128_v32 = vld [vmem:[#allocation2 + $0x8] sm:$0xff] }
  0x8f   :  { %v86_v2 = vpop.xlane.xlu0 %85 }
  0x90   :  { %v89_v3 = vsub.f32 %v83_v0, %v86_v2 }
  0x92   :  { %v91_v4 = vmul.f32 1.442695, %v89_v3 }
  0x93   :  { %v88_v5 = vpop.xlane.xlu0 %87 }
  0x94   :  { %186 = vpow2.f32 %v91_v4  ;;  %v90_v6 = vsub.f32 %v84_v1, %v88_v5 }
  0x96   :  { %v93_v7 = vmul.f32 1.442695, %v90_v6 }
  0x98   :  { %188 = vpow2.f32 %v93_v7 }
  0x9e   :  { %v187_v8 = vpop.eup %186 }
  0x9f   :  { %95 = vadd.xlane.f32.xlu1 %v187_v8  ;;  %v99_v9 = vmul.f32 %v187_v8, %v89_v3 }
  0xa1   :  { %101 = vadd.xlane.f32.xlu0 %v99_v9 }
  0xa2   :  { %v189_v10 = vpop.eup %188 }
  0xa3   :  { %97 = vadd.xlane.f32.xlu1 %v189_v10  ;;  %v100_v11 = vmul.f32 %v189_v10, %v90_v6 }
  0xa7   :  { %103 = vadd.xlane.f32.xlu1 %v100_v11 }
 0x12c   :  { %v96_v13 = vpop.xlane.xlu1 %95 }
 0x12d   :  { %190 = vlog2.f32 %v96_v13 }
 0x12e   :  { %192 = vrcp.f32 %v96_v13  ;;  %v102_v18 = vpop.xlane.xlu0 %101 }
 0x130   :  { %v98_v14 = vpop.xlane.xlu1 %97 }
 0x131   :  { %194 = vlog2.f32 %v98_v14 }
 0x132   :  { %196 = vrcp.f32 %v98_v14 }
 0x134   :  { %v104_v26 = vpop.xlane.xlu1 %103 }
 0x137   :  { %v191_v15 = vpop.eup %190 }
 0x138   :  { %v193_v16 = vpop.eup %192  ;;  %v106_v17 = vmul.f32 0.6931472, %v191_v15 }
 0x139   :  { %v110_v19 = vmul.f32 %v193_v16, %v102_v18 }
 0x13b   :  { %v195_v21 = vpop.eup %194  ;;  %v113_v22 = vsub.f32 %v106_v17, %v110_v19 }
 0x13c   :  { %v197_v23 = vpop.eup %196  ;;  %v108_v25 = vmul.f32 0.6931472, %v195_v21 }
 0x13d   :  { %v129_v27 = vmul.f32 %v115_v20, %v113_v22  ;;  %v112_v28 = vmul.f32 %v197_v23, %v104_v26 }
 0x13f   :  { %v133_v30 = vadd.f32 %v129_v27, %v127_v24  ;;  %v114_v31 = vsub.f32 %v108_v25, %v112_v28 }
 0x141   :  { %136 = vst.msk [vmem:[#allocation2] sm:$0xff] %vm80_vm0, %v133_v30  ;;  %v130_v33 = vmul.f32 %v116_v29, %v114_v31 }
 0x143   :  { %v134_v34 = vadd.f32 %v130_v33, %v128_v32 }
 0x145   :  { %137 = vst.msk [vmem:[#allocation2 + $0x8] sm:$0xff] %vm80_vm0, %v134_v34 }
 0x148   :  { %v141_v35 = vld [vmem:[#allocation2] sm:$0xff] }
 0x149   :  { %v143_v37 = vsel %vm80_vm0, %v141_v35, 0.0 }
 0x14c   :  { %v142_v36 = vld [vmem:[#allocation2 + $0x8] sm:$0xff] }
 0x14d   :  { %v144_v38 = vsel %vm80_vm0, %v142_v36, 0.0 }
 0x14e   :  { %v145_v39 = vadd.f32 %v144_v38, %v143_v37 }
 0x150   :  { %146 = vadd.xlane.f32.xlu0 %v145_v39 }
 0x1dd   :  { %v147_v40 = vpop.xlane.xlu0 %146 }
 0x1de   :  { %v148_v41 = vrot.slane %v147_v40, 4 }
 0x1e0   :  { %v149_v42 = vadd.f32 %v148_v41, %v147_v40 }
 0x1e2   :  { %v150_v43 = vrot.slane %v149_v42, 2 }
 0x1e4   :  { %v151_v44 = vadd.f32 %v150_v43, %v149_v42 }
 0x1e6   :  { %v152_v45 = vrot.slane %v151_v44, 1 }
 0x1e8   :  { %v153_v46 = vadd.f32 %v152_v45, %v151_v44 }
 0x1ea   :  { %182 = vpush %v153_v46 }
 0x21b   :  { %s183_s1 = spop %182 }
 0x21c   :  { %156 = sst [smem:[#allocation3]] %s183_s1 }
 0x21d   :  { %207 = shalt.err (!%p204_p2)
}
 0x21e   :  { %s211_s23 = smov [#allocation3]  }
 0x21f   :  { %164 = dma.smem_to_hbm %s211_s23, 16, %s259_s2, [#allocation4]  }
 0x220   :  { %208 = dma.done.wait [#allocation4], 16  }
 0x221   :  { %209 = vsyncadd [#allocation4], 4294967280 }
 0x222   :  { %168 = sfence }
 0x223   :  { %169 = vsyncpa [#allocation4], 1 }

</bundles_post_ra>
